<compile_context>
chip_gen: v7x
topology: tpu7x:2x2x1
jax: 0.10.0
libtpu: 0.0.40
codegen_flags: <defaults>
</compile_context>

<pallas_src>
import functools

import jax
import jax.numpy as jnp
from jax import lax
from jax.experimental import pallas as pl
from jax.experimental.pallas import tpu as pltpu

LANE = 128
_TILE_BYTES_BUDGET = 4 << 20  # padded bytes of x per pipeline buffer


def _round_up(a, b):
    return (a + b - 1) // b * b


def _cdiv(a, b):
    return -(-a // b)


def _fused_bn_kernel(gamma_ref, beta_ref, x_ref, o_ref,
                     acc_sum, acc_sq, scale_ref, shift_ref,
                     *, count, eps, hw, tile_hw, bn, n_total,
                     ragged_hw, ragged_n):
    phase = pl.program_id(0)          # 0 = stats, 1 = normalize
    ni = pl.program_id(1)             # tile index along N
    mi = pl.program_id(2)             # tile index along H*W (lanes)
    last_n = pl.num_programs(1) - 1
    last_m = pl.num_programs(2) - 1

    @pl.when((phase == 0) & (ni == 0) & (mi == 0))
    def _():
        acc_sum[...] = jnp.zeros_like(acc_sum)
        acc_sq[...] = jnp.zeros_like(acc_sq)

    # Phase 0: per-tile reduction into tiny (1, C, 1) accumulators.
    @pl.when(phase == 0)
    def _():
        x = x_ref[...].astype(jnp.float32)          # (bn, C, tile_hw)
        if ragged_hw:                               # static flag
            col = mi * tile_hw + lax.broadcasted_iota(jnp.int32, x.shape, 2)
            x = jnp.where(col < hw, x, 0.0)
        if ragged_n:                                # static flag
            row = ni * bn + lax.broadcasted_iota(jnp.int32, x.shape, 0)
            x = jnp.where(row < n_total, x, 0.0)
        # Lane reduce (XLU, idle slot) then leading-dim reduce; accumulator
        # stays (1, C, 1) -> no full-width stores in the streaming loop.
        s = jnp.sum(jnp.sum(x, axis=2, keepdims=True), axis=0, keepdims=True)
        ss = jnp.sum(jnp.sum(x * x, axis=2, keepdims=True), axis=0, keepdims=True)
        acc_sum[...] += s
        acc_sq[...] += ss

    # Phase-0 epilogue: derive per-channel scale/shift once.
    @pl.when((phase == 0) & (ni == last_n) & (mi == last_m))
    def _():
        inv_count = 1.0 / count
        mean = acc_sum[...] * inv_count
        # guard E[x^2]-E[x]^2 cancellation
        var = jnp.maximum(acc_sq[...] * inv_count - mean * mean, 0.0)
        inv_std = lax.rsqrt(var + eps)
        scale = gamma_ref[...] * inv_std
        scale_ref[...] = scale
        shift_ref[...] = beta_ref[...] - mean * scale

    # Phase 1: streaming FMA with the precomputed per-channel scale/shift.
    @pl.when(phase == 1)
    def _():
        x = x_ref[...].astype(jnp.float32)
        o_ref[...] = (x * scale_ref[...] + shift_ref[...]).astype(o_ref.dtype)


def switchable_batchnorm2d(x_nchw, gamma, beta, *, eps=1e-5):
    """Training-mode BatchNorm2d on the max-width branch (NCHW in / NCHW out)."""
    n, c, h, w = x_nchw.shape
    assert gamma.shape == (c,) and beta.shape == (c,)
    hw = h * w
    dtype = x_nchw.dtype
    itemsize = jnp.dtype(dtype).itemsize

    # Sublane padding of the channel axis: 8 rows for 4-byte dtypes,
    # 16 for 2-byte, 32 for 1-byte.
    sublane = 8 * (4 // itemsize) if itemsize in (1, 2, 4) else 8
    c_pad = _round_up(c, sublane)

    # (N, C, H, W) -> (N, C, H*W): contiguous reshape, no extra HBM pass.
    x_ncm = x_nchw.reshape(n, c, hw)

    # Tile selection with padded-VMEM accounting.
    hw_lanes = _round_up(hw, LANE)
    single_hw_tile_bytes = c_pad * hw_lanes * itemsize
    if single_hw_tile_bytes <= _TILE_BYTES_BUDGET:
        # Whole H*W per block; pack as many batch images per block as fit.
        tile_hw, grid_hw, ragged_hw = hw, 1, False
        bn = max(1, min(n, _TILE_BYTES_BUDGET // single_hw_tile_bytes))
        grid_n = _cdiv(n, bn)
        ragged_n = (n % bn) != 0
    else:
        # Split H*W into balanced 128-multiple tiles; last tile masked in-kernel.
        bn, grid_n, ragged_n = 1, n, False
        max_tile_hw = max(LANE,
                          (_TILE_BYTES_BUDGET // (c_pad * itemsize)) // LANE * LANE)
        num_tiles = _cdiv(hw, max_tile_hw)
        tile_hw = _round_up(_cdiv(hw, num_tiles), LANE)
        grid_hw = _cdiv(hw, tile_hw)
        ragged_hw = (hw % tile_hw) != 0

    gamma3d = gamma.reshape(1, c, 1).astype(jnp.float32)
    beta3d = beta.reshape(1, c, 1).astype(jnp.float32)

    kernel = functools.partial(
        _fused_bn_kernel,
        count=float(n * hw), eps=float(eps),
        hw=hw, tile_hw=tile_hw, bn=bn, n_total=n,
        ragged_hw=ragged_hw, ragged_n=ragged_n)

    y_ncm = pl.pallas_call(
        kernel,
        out_shape=jax.ShapeDtypeStruct((n, c, hw), dtype),
        grid_spec=pltpu.PrefetchScalarGridSpec(
            num_scalar_prefetch=0,
            grid=(2, grid_n, grid_hw),                          # (phase, n, hw)
            in_specs=[
                pl.BlockSpec((1, c, 1), lambda p, i, j: (0, 0, 0)),   # gamma
                pl.BlockSpec((1, c, 1), lambda p, i, j: (0, 0, 0)),   # beta
                pl.BlockSpec((bn, c, tile_hw), lambda p, i, j: (i, 0, j)),  # x
            ],
            # Output block index stays (0,0,0) through phase 0 (no garbage
            # writebacks), then tracks (n, hw) tiles in phase 1.
            out_specs=pl.BlockSpec((bn, c, tile_hw),
                                   lambda p, i, j: (p * i, 0, p * j)),
            scratch_shapes=[
                pltpu.VMEM((1, c, 1), jnp.float32),   # per-channel sum
                pltpu.VMEM((1, c, 1), jnp.float32),   # per-channel sum of squares
                pltpu.VMEM((1, c, 1), jnp.float32),   # scale
                pltpu.VMEM((1, c, 1), jnp.float32),   # shift
            ],
        ),
        compiler_params=pltpu.CompilerParams(
            dimension_semantics=("arbitrary", "arbitrary", "arbitrary"),
            vmem_limit_bytes=32 << 20),
    )(gamma3d, beta3d, x_ncm)

    # (N, C, H*W) -> NCHW: free reshape.
    return y_ncm.reshape(n, c, h, w)


def _reference_bn(x_nchw, gamma, beta, eps=1e-5):
    mean = jnp.mean(x_nchw, axis=(0, 2, 3), keepdims=True)
    var = jnp.mean((x_nchw - mean) ** 2, axis=(0, 2, 3), keepdims=True)
    g = gamma.reshape(1, -1, 1, 1)
    b = beta.reshape(1, -1, 1, 1)
    return (x_nchw - mean) * lax.rsqrt(var + eps) * g + b


if __name__ == "__main__":
    # Module config: num_features_list = [2, 4] -> selected branch has 4 channels.
    num_features_list = [2, 4]
    num_features = max(num_features_list)

    key = jax.random.PRNGKey(0)
    kx, kg, kb = jax.random.split(key, 3)

    x = jax.random.normal(kx, (2, num_features, 16, 16), dtype=jnp.float32)
    # PyTorch default init is weight=1, bias=0; use deterministic random affine
    # params instead to exercise the scale/shift broadcast path.
    gamma = jax.random.normal(kg, (num_features,), dtype=jnp.float32)
    beta = jax.random.normal(kb, (num_features,), dtype=jnp.float32)

    y = switchable_batchnorm2d(x, gamma, beta)
    y = jax.block_until_ready(y)

    y_ref = _reference_bn(x, gamma, beta)
    assert y.shape == x.shape and y.dtype == x.dtype
    assert jnp.max(jnp.abs(y - y_ref)) < 1e-4

    print("KERNEL_OK")
</pallas_src>

<mosaic_0001>
module attributes {stable_mosaic.version = 11 : i64} {
  func.func @_fused_bn_kernel(%arg0: i32, %arg1: i32, %arg2: i32, %arg3: memref<1x4x1xf32, #tpu.memory_space<vmem>>, %arg4: memref<1x4x1xf32, #tpu.memory_space<vmem>>, %arg5: memref<2x4x256xf32, #tpu.memory_space<vmem>>, %arg6: memref<2x4x256xf32, #tpu.memory_space<vmem>>, %arg7: memref<1x4x1xf32, #tpu.memory_space<vmem>>, %arg8: memref<1x4x1xf32, #tpu.memory_space<vmem>>, %arg9: memref<1x4x1xf32, #tpu.memory_space<vmem>>, %arg10: memref<1x4x1xf32, #tpu.memory_space<vmem>>) attributes {dimension_semantics = [#tpu.dimension_semantics<arbitrary>, #tpu.dimension_semantics<arbitrary>, #tpu.dimension_semantics<arbitrary>], iteration_bounds = array<i64: 2, 1, 1>, scalar_prefetch = 0 : i64, scratch_operands = 4 : i64, tpu.core_type = #tpu.core_type<tc>, window_params = [{pipeline_mode = #tpu.pipeline_mode<synchronous>, transform_indices = @transform_0, window_bounds = array<i64: 1, 4, 1>}, {pipeline_mode = #tpu.pipeline_mode<synchronous>, transform_indices = @transform_1, window_bounds = array<i64: 1, 4, 1>}, {transform_indices = @transform_2, window_bounds = array<i64: 2, 4, 256>}, {transform_indices = @transform_3, window_bounds = array<i64: 2, 4, 256>}]} {
    %c0_i32 = arith.constant 0 : i32
    %0 = arith.cmpi eq, %arg0, %c0_i32 : i32
    %c0_i32_0 = arith.constant 0 : i32
    %1 = arith.cmpi eq, %arg1, %c0_i32_0 : i32
    %2 = arith.andi %0, %1 : i1
    %c0_i32_1 = arith.constant 0 : i32
    %3 = arith.cmpi eq, %arg2, %c0_i32_1 : i32
    %4 = arith.andi %2, %3 : i1
    %5 = arith.extui %4 : i1 to i32
    %c0_i32_2 = arith.constant 0 : i32
    %6 = arith.cmpi ne, %5, %c0_i32_2 : i32
    scf.if %6 {
      %cst = arith.constant 0.000000e+00 : f32
      %20 = vector.broadcast %cst : f32 to vector<1x4x1xf32>
      %c0 = arith.constant 0 : index
      %c0_10 = arith.constant 0 : index
      %c0_11 = arith.constant 0 : index
      %21 = vector.load %arg7[%c0, %c0_10, %c0_11] : memref<1x4x1xf32, #tpu.memory_space<vmem>>, vector<1x4x1xf32>
      tpu.vector_store %arg7[%c0, %c0_10, %c0_11], %20 {strides = array<i32>} : memref<1x4x1xf32, #tpu.memory_space<vmem>>, vector<1x4x1xf32>,
      %cst_12 = arith.constant 0.000000e+00 : f32
      %22 = vector.broadcast %cst_12 : f32 to vector<1x4x1xf32>
      %c0_13 = arith.constant 0 : index
      %c0_14 = arith.constant 0 : index
      %c0_15 = arith.constant 0 : index
      %23 = vector.load %arg8[%c0_13, %c0_14, %c0_15] : memref<1x4x1xf32, #tpu.memory_space<vmem>>, vector<1x4x1xf32>
      tpu.vector_store %arg8[%c0_13, %c0_14, %c0_15], %22 {strides = array<i32>} : memref<1x4x1xf32, #tpu.memory_space<vmem>>, vector<1x4x1xf32>,
    } else {
    }
    %c0_i32_3 = arith.constant 0 : i32
    %7 = arith.cmpi eq, %arg0, %c0_i32_3 : i32
    %8 = arith.extui %7 : i1 to i32
    %c0_i32_4 = arith.constant 0 : i32
    %9 = arith.cmpi ne, %8, %c0_i32_4 : i32
    scf.if %9 {
      %c0 = arith.constant 0 : index
      %c0_10 = arith.constant 0 : index
      %c0_11 = arith.constant 0 : index
      %20 = vector.load %arg5[%c0, %c0_10, %c0_11] : memref<2x4x256xf32, #tpu.memory_space<vmem>>, vector<2x4x256xf32>
      %cst = arith.constant dense<0.000000e+00> : vector<2x4xf32>
      %21 = vector.multi_reduction <add>, %20, %cst [2] : vector<2x4x256xf32> to vector<2x4xf32>
      %22 = vector.shape_cast %21 : vector<2x4xf32> to vector<2x4x1xf32>
      %cst_12 = arith.constant dense<0.000000e+00> : vector<4x1xf32>
      %23 = vector.multi_reduction <add>, %22, %cst_12 [0] : vector<2x4x1xf32> to vector<4x1xf32>
      %24 = vector.shape_cast %23 : vector<4x1xf32> to vector<1x4x1xf32>
      %25 = arith.mulf %20, %20 : vector<2x4x256xf32>
      %cst_13 = arith.constant dense<0.000000e+00> : vector<2x4xf32>
      %26 = vector.multi_reduction <add>, %25, %cst_13 [2] : vector<2x4x256xf32> to vector<2x4xf32>
      %27 = vector.shape_cast %26 : vector<2x4xf32> to vector<2x4x1xf32>
      %cst_14 = arith.constant dense<0.000000e+00> : vector<4x1xf32>
      %28 = vector.multi_reduction <add>, %27, %cst_14 [0] : vector<2x4x1xf32> to vector<4x1xf32>
      %29 = vector.shape_cast %28 : vector<4x1xf32> to vector<1x4x1xf32>
      %c0_15 = arith.constant 0 : index
      %c0_16 = arith.constant 0 : index
      %c0_17 = arith.constant 0 : index
      %30 = vector.load %arg7[%c0_15, %c0_16, %c0_17] : memref<1x4x1xf32, #tpu.memory_space<vmem>>, vector<1x4x1xf32>
      %31 = arith.addf %30, %24 : vector<1x4x1xf32>
      %c0_18 = arith.constant 0 : index
      %c0_19 = arith.constant 0 : index
      %c0_20 = arith.constant 0 : index
      %32 = vector.load %arg7[%c0_18, %c0_19, %c0_20] : memref<1x4x1xf32, #tpu.memory_space<vmem>>, vector<1x4x1xf32>
      tpu.vector_store %arg7[%c0_18, %c0_19, %c0_20], %31 {strides = array<i32>} : memref<1x4x1xf32, #tpu.memory_space<vmem>>, vector<1x4x1xf32>,
      %c0_21 = arith.constant 0 : index
      %c0_22 = arith.constant 0 : index
      %c0_23 = arith.constant 0 : index
      %33 = vector.load %arg8[%c0_21, %c0_22, %c0_23] : memref<1x4x1xf32, #tpu.memory_space<vmem>>, vector<1x4x1xf32>
      %34 = arith.addf %33, %29 : vector<1x4x1xf32>
      %c0_24 = arith.constant 0 : index
      %c0_25 = arith.constant 0 : index
      %c0_26 = arith.constant 0 : index
      %35 = vector.load %arg8[%c0_24, %c0_25, %c0_26] : memref<1x4x1xf32, #tpu.memory_space<vmem>>, vector<1x4x1xf32>
      tpu.vector_store %arg8[%c0_24, %c0_25, %c0_26], %34 {strides = array<i32>} : memref<1x4x1xf32, #tpu.memory_space<vmem>>, vector<1x4x1xf32>,
    } else {
    }
    %c0_i32_5 = arith.constant 0 : i32
    %10 = arith.cmpi eq, %arg0, %c0_i32_5 : i32
    %c0_i32_6 = arith.constant 0 : i32
    %11 = arith.cmpi eq, %arg1, %c0_i32_6 : i32
    %12 = arith.andi %10, %11 : i1
    %c0_i32_7 = arith.constant 0 : i32
    %13 = arith.cmpi eq, %arg2, %c0_i32_7 : i32
    %14 = arith.andi %12, %13 : i1
    %15 = arith.extui %14 : i1 to i32
    %c0_i32_8 = arith.constant 0 : i32
    %16 = arith.cmpi ne, %15, %c0_i32_8 : i32
    scf.if %16 {
      %c0 = arith.constant 0 : index
      %c0_10 = arith.constant 0 : index
      %c0_11 = arith.constant 0 : index
      %20 = vector.load %arg7[%c0, %c0_10, %c0_11] : memref<1x4x1xf32, #tpu.memory_space<vmem>>, vector<1x4x1xf32>
      %cst = arith.constant 0.001953125 : f32
      %21 = vector.broadcast %cst : f32 to vector<1x4x1xf32>
      %22 = arith.mulf %20, %21 : vector<1x4x1xf32>
      %c0_12 = arith.constant 0 : index
      %c0_13 = arith.constant 0 : index
      %c0_14 = arith.constant 0 : index
      %23 = vector.load %arg8[%c0_12, %c0_13, %c0_14] : memref<1x4x1xf32, #tpu.memory_space<vmem>>, vector<1x4x1xf32>
      %cst_15 = arith.constant 0.001953125 : f32
      %24 = vector.broadcast %cst_15 : f32 to vector<1x4x1xf32>
      %25 = arith.mulf %23, %24 : vector<1x4x1xf32>
      %26 = arith.mulf %22, %22 : vector<1x4x1xf32>
      %27 = arith.subf %25, %26 : vector<1x4x1xf32>
      %cst_16 = arith.constant 0.000000e+00 : f32
      %28 = vector.broadcast %cst_16 : f32 to vector<1x4x1xf32>
      %29 = arith.maximumf %27, %28 : vector<1x4x1xf32>
      %cst_17 = arith.constant 9.99999974E-6 : f32
      %30 = vector.broadcast %cst_17 : f32 to vector<1x4x1xf32>
      %31 = arith.addf %29, %30 : vector<1x4x1xf32>
      %32 = math.rsqrt %31 : vector<1x4x1xf32>
      %c0_18 = arith.constant 0 : index
      %c0_19 = arith.constant 0 : index
      %c0_20 = arith.constant 0 : index
      %33 = vector.load %arg3[%c0_18, %c0_19, %c0_20] : memref<1x4x1xf32, #tpu.memory_space<vmem>>, vector<1x4x1xf32>
      %34 = arith.mulf %33, %32 : vector<1x4x1xf32>
      %c0_21 = arith.constant 0 : index
      %c0_22 = arith.constant 0 : index
      %c0_23 = arith.constant 0 : index
      %35 = vector.load %arg9[%c0_21, %c0_22, %c0_23] : memref<1x4x1xf32, #tpu.memory_space<vmem>>, vector<1x4x1xf32>
      tpu.vector_store %arg9[%c0_21, %c0_22, %c0_23], %34 {strides = array<i32>} : memref<1x4x1xf32, #tpu.memory_space<vmem>>, vector<1x4x1xf32>,
      %c0_24 = arith.constant 0 : index
      %c0_25 = arith.constant 0 : index
      %c0_26 = arith.constant 0 : index
      %36 = vector.load %arg4[%c0_24, %c0_25, %c0_26] : memref<1x4x1xf32, #tpu.memory_space<vmem>>, vector<1x4x1xf32>
      %37 = arith.mulf %22, %34 : vector<1x4x1xf32>
      %38 = arith.subf %36, %37 : vector<1x4x1xf32>
      %c0_27 = arith.constant 0 : index
      %c0_28 = arith.constant 0 : index
      %c0_29 = arith.constant 0 : index
      %39 = vector.load %arg10[%c0_27, %c0_28, %c0_29] : memref<1x4x1xf32, #tpu.memory_space<vmem>>, vector<1x4x1xf32>
      tpu.vector_store %arg10[%c0_27, %c0_28, %c0_29], %38 {strides = array<i32>} : memref<1x4x1xf32, #tpu.memory_space<vmem>>, vector<1x4x1xf32>,
    } else {
    }
    %c1_i32 = arith.constant 1 : i32
    %17 = arith.cmpi eq, %arg0, %c1_i32 : i32
    %18 = arith.extui %17 : i1 to i32
    %c0_i32_9 = arith.constant 0 : i32
    %19 = arith.cmpi ne, %18, %c0_i32_9 : i32
    scf.if %19 {
      %c0 = arith.constant 0 : index
      %c0_10 = arith.constant 0 : index
      %c0_11 = arith.constant 0 : index
      %20 = vector.load %arg5[%c0, %c0_10, %c0_11] : memref<2x4x256xf32, #tpu.memory_space<vmem>>, vector<2x4x256xf32>
      %c0_12 = arith.constant 0 : index
      %c0_13 = arith.constant 0 : index
      %c0_14 = arith.constant 0 : index
      %21 = vector.load %arg9[%c0_12, %c0_13, %c0_14] : memref<1x4x1xf32, #tpu.memory_space<vmem>>, vector<1x4x1xf32>
      %22 = vector.broadcast %21 : vector<1x4x1xf32> to vector<2x4x256xf32>
      %23 = arith.mulf %20, %22 : vector<2x4x256xf32>
      %c0_15 = arith.constant 0 : index
      %c0_16 = arith.constant 0 : index
      %c0_17 = arith.constant 0 : index
      %24 = vector.load %arg10[%c0_15, %c0_16, %c0_17] : memref<1x4x1xf32, #tpu.memory_space<vmem>>, vector<1x4x1xf32>
      %25 = vector.broadcast %24 : vector<1x4x1xf32> to vector<2x4x256xf32>
      %26 = arith.addf %23, %25 : vector<2x4x256xf32>
      %c0_18 = arith.constant 0 : index
      %c0_19 = arith.constant 0 : index
      %c0_20 = arith.constant 0 : index
      %27 = vector.load %arg6[%c0_18, %c0_19, %c0_20] : memref<2x4x256xf32, #tpu.memory_space<vmem>>, vector<2x4x256xf32>
      tpu.vector_store %arg6[%c0_18, %c0_19, %c0_20], %26 {strides = array<i32>} : memref<2x4x256xf32, #tpu.memory_space<vmem>>, vector<2x4x256xf32>,
    } else {
    }
    return
  }
  func.func @transform_0(%arg0: i32, %arg1: i32, %arg2: i32) -> (i32, i32, i32) {
    %c0_i32 = arith.constant 0 : i32
    %c0_i32_0 = arith.constant 0 : i32
    %c0_i32_1 = arith.constant 0 : i32
    %c0_i32_2 = arith.constant 0 : i32
    return %c0_i32, %c0_i32_0, %c0_i32_1 : i32, i32, i32
  }
  func.func @transform_1(%arg0: i32, %arg1: i32, %arg2: i32) -> (i32, i32, i32) {
    %c0_i32 = arith.constant 0 : i32
    %c0_i32_0 = arith.constant 0 : i32
    %c0_i32_1 = arith.constant 0 : i32
    %c0_i32_2 = arith.constant 0 : i32
    return %c0_i32, %c0_i32_0, %c0_i32_1 : i32, i32, i32
  }
  func.func @transform_2(%arg0: i32, %arg1: i32, %arg2: i32) -> (i32, i32, i32) {
    %c0_i32 = arith.constant 0 : i32
    %c0_i32_0 = arith.constant 0 : i32
    return %arg1, %c0_i32, %arg2 : i32, i32, i32
  }
  func.func @transform_3(%arg0: i32, %arg1: i32, %arg2: i32) -> (i32, i32, i32) {
    %0 = arith.muli %arg0, %arg1 : i32
    %1 = arith.muli %arg0, %arg2 : i32
    %c0_i32 = arith.constant 0 : i32
    %c0_i32_0 = arith.constant 0 : i32
    return %0, %c0_i32, %1 : i32, i32, i32
  }
}

</mosaic_0001>

<bundles_post_ra>
// kernel: tpu_custom_call.1
= control target key start
LH: loop header
LB: loop body
LE: loop exit
PB: predicated region body
PF: predicated region fallthrough
CT: control target
= control target key end

     0   :  { %8 = vsyncpa [#allocation7], 0  ;;  %s681_s0 = inlined_call_operand.vmem [shape: f32[1,4,1], index: 0, kind: input, shape index: {}]   ;;  %s682_s1 = inlined_call_operand.vmem [shape: f32[1,4,1], index: 1, kind: input, shape index: {}]   ;;  %s683_s2 = inlined_call_operand.vmem [shape: f32[2,4,256], index: 2, kind: input, shape index: {}]   ;;  %s684_s3 = inlined_call_operand.hbm [shape: f32[2,4,256], index: 3, kind: output, shape index: {}]  }
   0x1   :  { %10 = vsyncpa [#allocation7 + $0x1], 0  ;;  %s586_s12 = smov 0   ;;  %s588_s13 = smov 0  }
   0x2   :  { %s590_s14 = smov 0  }
   0x3 LB: > { %s445_s15 = sadd.s32 4294967295, %s558_s14   ;;  %s446_s16 = sadd.s32 4294967294, %s558_s14   ;;  %s558_s14 = sphi %s590_s14, %s16_s14   ;;  %s554_s13 = sphi %s588_s13, %s687_s13   ;;  %s550_s12 = sphi %s586_s12, %s686_s12  }
   0x4   : > { %s35_s17 = sadd.s32 1, %s554_s13  ;;  %p449_p0 = scmp.ge.s32.totalorder %s558_s14, 1 }
   0x5   : > { %p37_p1 = scmp.ge.s32.totalorder %s35_s17, 2  ;;  %p174_p2 = scmp.lt.s32.totalorder %s558_s14, 3 }
   0x7   : > { %s689_s17 = smov (%p37_p1, %s35_s17), 0  ;;  %p175_p3 = pnand %p449_p0, %p174_p2 }
   0x8   : > { %p219_p4 = scmp.eq.s32.totalorder (!%p175_p3), %s550_s12, 0 }
   0x9   : > { %178 = sbr.rel (%p175_p3) target bundleno = 381 (0x17d), region = 32 }
  0x10   : > { %227 = sbr.rel (!%p219_p4) target bundleno = 23 (0x17), region = 36  ;;  %vm228_vm0 = vcmask (%p219_p4), 3072   ;;  %v560_v0 = vmov (%p219_p4), 0.0  }
  0x11   : > { %229 = vst.msk [vmem:[#allocation2] sm:$0xf] (%p219_p4), %vm228_vm0, %v560_v0  ;;  %230 = vst.msk [vmem:[#allocation3] sm:$0xf] (%p219_p4), %vm228_vm0, %v560_v0 }
  0x17 PF: > { %p452_p5 = scmp.ne.s32.totalorder %s550_s12, 0 }
  0x18   : > { %v234_v1 = vld [vmem:[%s683_s2] sm:$0xff] (!%p452_p5)  ;;  %vm242_vm1 = vcmask (!%p452_p5), 1043456   ;;  %v235_v2 = vld [vmem:[%s683_s2 + $0x8] sm:$0xff] (!%p452_p5)  ;;  %v277_v25 = vld [vmem:[#allocation2] sm:$0xf] (!%p452_p5)  ;;  %vm279_vm2 = vcmask (!%p452_p5), 3072  }
  0x19   : > { %233 = sbr.rel (%p452_p5) target bundleno = 184 (0xb8), region = 40  ;;  %v238_v3 = vcombine.high (!%p452_p5), %v234_v1, %v234_v1  ;;  %v243_v4 = vsel (!%p452_p5), %vm242_vm1, %v234_v1, 0.0  ;;  %v256_v5 = vmul.f32 (!%p452_p5), %v234_v1, %v234_v1  ;;  %v239_v6 = vcombine.high (!%p452_p5), %v235_v2, %v235_v2  ;;  %v281_v30 = vld [vmem:[#allocation3] sm:$0xf] (!%p452_p5) }
  0x1a   : > { %v248_v7 = vsel (!%p452_p5), %vm242_vm1, %v235_v2, 0.0  ;;  %v257_v8 = vmul.f32 (!%p452_p5), %v235_v2, %v235_v2 }
  0x1b   : > { %v244_v9 = vsel (!%p452_p5), %vm242_vm1, %v238_v3, 0.0  ;;  %v260_v10 = vcombine.high (!%p452_p5), %v256_v5, %v256_v5  ;;  %v264_v11 = vsel (!%p452_p5), %vm242_vm1, %v256_v5, 0.0  ;;  %v249_v12 = vsel (!%p452_p5), %vm242_vm1, %v239_v6, 0.0 }
  0x1c   : > { %v245_v13 = vadd.f32 (!%p452_p5), %v244_v9, %v243_v4  ;;  %v261_v14 = vcombine.high (!%p452_p5), %v257_v8, %v257_v8  ;;  %v269_v16 = vsel (!%p452_p5), %vm242_vm1, %v257_v8, 0.0  ;;  %v250_v18 = vadd.f32 (!%p452_p5), %v249_v12, %v248_v7 }
  0x1d   : > { %v265_v15 = vsel (!%p452_p5), %vm242_vm1, %v260_v10, 0.0 }
  0x1e   : > { %246 = vadd.xlane.f32.xlu0 (!%p452_p5), %v245_v13  ;;  %v266_v17 = vadd.f32 (!%p452_p5), %v265_v15, %v264_v11  ;;  %v270_v19 = vsel (!%p452_p5), %vm242_vm1, %v261_v14, 0.0 }
  0x1f   : > { %v271_v20 = vadd.f32 (!%p452_p5), %v270_v19, %v269_v16 }
  0x20   : > { %267 = vadd.xlane.f32.xlu1 %v266_v17 }
  0x22   : > { %251 = vadd.xlane.f32.xlu0 %v250_v18 }
  0x24   : > { %272 = vadd.xlane.f32.xlu1 %v271_v20 }
  0xab   : > { %v247_v21 = vpop.xlane.xlu0 %246 }
  0xac   : > { %v253_v24 = vsel %vm242_vm1, %v247_v21, 0.0 }
  0xad   : > { %v268_v22 = vpop.xlane.xlu1 %267 }
  0xae   : > { %v274_v29 = vsel %vm242_vm1, %v268_v22, 0.0 }
  0xaf   : > { %v252_v23 = vpop.xlane.xlu0 %251 }
  0xb0   : > { %v254_v26 = vsel %vm242_vm1, %v252_v23, 0.0 }
  0xb1   : > { %v255_v27 = vadd.f32 %v254_v26, %v253_v24  ;;  %v273_v28 = vpop.xlane.xlu1 %272 }
  0xb2   : > { %v275_v31 = vsel %vm242_vm1, %v273_v28, 0.0 }
  0xb3   : > { %v278_v32 = vadd.f32 %v277_v25, %v255_v27  ;;  %v276_v33 = vadd.f32 %v275_v31, %v274_v29 }
  0xb5   : > { %280 = vst.msk [vmem:[#allocation2] sm:$0xf] %vm279_vm2, %v278_v32  ;;  %v282_v34 = vadd.f32 %v281_v30, %v276_v33 }
  0xb7   : > { %283 = vst.msk [vmem:[#allocation3] sm:$0xf] %vm279_vm2, %v282_v34 }
  0xb8 PF: > { %285 = sbr.rel (!%p219_p4) target bundleno = 217 (0xd9), region = 44  ;;  %v295_v43 = vld [vmem:[%s681_s0] sm:$0xf] (%p219_p4)  ;;  %vm297_vm3 = vcmask (%p219_p4), 3072  }
  0xb9   : > { %v299_v46 = vld [vmem:[%s682_s1] sm:$0xf] (%p219_p4) }
  0xbc   : > { %v286_v35 = vld [vmem:[#allocation2] sm:$0xf] (%p219_p4) }
  0xbd   : > { %v287_v37 = vmul.f32 (%p219_p4), 0.001953125, %v286_v35 }
  0xbe   : > { %v288_v36 = vld [vmem:[#allocation3] sm:$0xf] (%p219_p4) }
  0xbf   : > { %v289_v38 = vmul.f32 0.001953125, %v288_v36  ;;  %v290_v39 = vmul.f32 %v287_v37, %v287_v37 }
  0xc1   : > { %v291_v40 = vsub.f32 %v289_v38, %v290_v39 }
  0xc3   : > { %v292_v41 = vmax.f32 %v291_v40, 0.0 }
  0xc5   : > { %v293_v42 = vadd.f32 1e-05, %v292_v41 }
  0xc7   : > { %503 = vrsqrt.f32 %v293_v42 }
  0xd1   : > { %v504_v44 = vpop.eup %503 }
  0xd2   : > { %v296_v45 = vmul.f32 %v504_v44, %v295_v43 }
  0xd4   : > { %298 = vst.msk [vmem:[#allocation4] sm:$0xf] %vm297_vm3, %v296_v45  ;;  %v300_v47 = vmul.f32 %v296_v45, %v287_v37 }
  0xd6   : > { %v301_v48 = vsub.f32 %v299_v46, %v300_v47 }
  0xd8   : > { %302 = vst.msk [vmem:[#allocation5] sm:$0xf] %vm297_vm3, %v301_v48 }
  0xd9 PF: > { %p453_p6 = scmp.ne.s32.totalorder %s550_s12, 1 }
  0xda   : > { %v561_v50 = vmov (!%p453_p6), 0   ;;  %v562_v52 = vmov (!%p453_p6), 839922192   ;;  %v317_v54 = vlaneseq (!%p453_p6)  ;;  %v307_v60 = vld [vmem:[%s683_s2] sm:$0xff] (!%p453_p6)  ;;  %v308_v61 = vld [vmem:[%s683_s2 + $0x8] sm:$0xff] (!%p453_p6) }
  0xdb   : > { %306 = sbr.rel (%p453_p6) target bundleno = 357 (0x165), region = 48  ;;  %v309_v49 = vld [vmem:[#allocation4] sm:$0xf] (!%p453_p6)  ;;  %505 = vset.pattern.permute.xlu0 (!%p453_p6), %v561_v50  ;;  %v315_v53 = vunpack.c.l.s4 (!%p453_p6), %v562_v52 }
  0xdc   : > { %312 = vperm.xlu0 (!%p453_p6), %505, %v309_v49   ;;  %v318_v56 = vshrl.u32 (!%p453_p6), %v317_v54, 7 }
  0xdd   : > { %v316_v55 = vunpack.c.0.s8 (!%p453_p6), %v315_v53 }
  0xdf   : > { %v324_v51 = vld [vmem:[#allocation5] sm:$0xf] (!%p453_p6)  ;;  %v319_v57 = vsub.s32 (!%p453_p6), %v316_v55, %v318_v56 }
  0xe0   : > { %327 = vperm.xlu0 (!%p453_p6), %505, %v324_v51  }
 0x15b   : > { %v313_v58 = vpop.permute.xlu0 %312 }
 0x15c   : > { %v320_v59 = vrot.slane %v313_v58, %v319_v57 }
 0x15e   : > { %v322_v63 = vmul.f32 %v320_v59, %v307_v60  ;;  %v323_v0 = vmul.f32 %v320_v59, %v308_v61 }
 0x15f   : > { %v328_v62 = vpop.permute.xlu0 %327 }
 0x160   : > { %v335_v1 = vrot.slane %v328_v62, %v319_v57 }
 0x162   : > { %v337_v2 = vadd.f32 %v335_v1, %v322_v63  ;;  %v338_v3 = vadd.f32 %v335_v1, %v323_v0 }
 0x164   : > { %339 = vst [vmem:[#allocation6] sm:$0xff] %v337_v2  ;;  %340 = vst [vmem:[#allocation6 + $0x8] sm:$0xff] %v338_v3 }
 0x165 PF: > { %p647_p7 = scmp.eq.s32.totalorder %s445_s15, 1  ;;  %s563_s4 = smov [#allocation6]  }
 0x166   : > { %s360_s5 = sshll.u32 %s563_s4, 4  ;;  %s361_s5 = int_to_ptr.vmem [resolvable:$true] %s360_s5 }
 0x167   : > { %s506_s6 = scalar_lea.vmem %s361_s5, 256  ;;  %s512_s7 = scalar_lea.vmem %s361_s5, 512 }
 0x168   : > { %p507_p8 = scmp.ne.s32.totalorder %s361_s5, %s506_s6  ;;  %p513_p11 = scmp.lt.s32.totalorder %s361_s5, %s361_s5 }
 0x169   : > { %p514_p12 = scmp.lt.s32.totalorder %s512_s7, %s506_s6 }
 0x16a   : > { %p508_p9 = pnand %p507_p8, %p647_p7 }
 0x16b   : > { %p515_p13 = por %p514_p12, %p513_p11 }
 0x16c   : > { %p509_p10 = pneg %p508_p9 }
 0x16e   : > { %p516_p0 = pnand %p515_p13, %p509_p10 }
 0x170   : > { %519 = shalt.err (!%p516_p0)
}
 0x171   : > { %s520_s10 = scalar_lea.hbm %s684_s3, 256 }
 0x172   : > { %p521_p1 = scmp.ne.s32.totalorder %s684_s3, %s520_s10  ;;  %p526_p4 = scmp.lt.u32.totalorder %s520_s10, %s684_s3 }
 0x174   : > { %p522_p2 = pnand %p521_p1, %p647_p7 }
 0x176   : > { %p523_p3 = pneg %p522_p2 }
 0x178   : > { %p528_p5 = pnand %p526_p4, %p523_p3 }
 0x17a   : > { %531 = shalt.err (!%p528_p5)
}
 0x17b   : > { %s564_s19 = smov 128   ;;  %s565_s20 = smov 8  }
 0x17c   : > { %461 = dma.vmem_to_hbm [thread:$0]  (%p647_p7), %s361_s5, 256, %s684_s3, [#allocation7], %s564_s19, %s564_s19, %s565_s20  }
 0x17d PF: > { %p469_p6 = scmp.ge.s32.totalorder %s558_s14, 2  ;;  %p470_p8 = scmp.eq.s32.totalorder %s446_s16, 1 }
 0x17f   : > { %p465_p9 = pnand %p470_p8, %p469_p6 }
 0x181   : > { %545 = dma.done.wait (!%p465_p9), [#allocation7], 256  }
 0x182   : > { %547 = vsyncadd (!%p465_p9), [#allocation7], 4294967040  ;;  %s16_s14 = sadd.s32 1, %s558_s14   ;;  %s686_s12 = smov %s554_s13 }
 0x183   : > { %p13_p10 = scmp.ge.s32.totalorder %s16_s14, 4   ;;  %s687_s13 = smov %s689_s17 }
 0x185   :  { %15 = sbr.rel (!%p13_p10) target bundleno = 3 (0x3), region = 83 }
 0x18c   :  { %381 = vsyncpa [#allocation7], 1 }
 0x18d   :  { %383 = vsyncpa [#allocation7 + $0x1], 1 }

</bundles_post_ra>
